<compile_context>
chip_gen: v7x
topology: tpu7x:2x2x1
jax: 0.10.0
libtpu: 0.0.40
codegen_flags: <defaults>
</compile_context>

<pallas_src>
import jax
import jax.numpy as jnp
from jax.experimental import pallas as pl
from jax.experimental.pallas import tpu as pltpu


def gmm_score_kernel(x_ref, w1_ref, w2_ref, muU_ref, explam_ref, logw_ref,
                     sel_ref, selT_ref, sig2_ref, o_ref):
    x = x_ref[...]                      # (TB, D)
    sig2 = sig2_ref[...]                # (TB, 1)

    # rot[b, c*D+e] = ((x[b] - mu_c) @ U_c)[e]; mean folded into the matmul.
    rot = jnp.dot(x, w1_ref[...],
                  preferred_element_type=jnp.float32) - muU_ref[...]     # (TB, C*D)

    # Lambdas[b, c*D+e] = exp(logLambda[c, e]) + sigma(t[b])^2
    lam = explam_ref[...] + sig2                                         # (TB, C*D)
    inv_lam = 1.0 / lam                                                  # computed once
    z = rot * inv_lam                                                    # (TB, C*D)

    # Per-component reductions via block-selector matmul (stays lane-dense).
    sel = sel_ref[...]                                                   # (C*D, C)
    logdet = jnp.dot(jnp.log(lam), sel,
                     preferred_element_type=jnp.float32)                 # (TB, C)
    mhd = jnp.dot(rot * z, sel,
                  preferred_element_type=jnp.float32)                    # (TB, C)
    lp = -0.5 * (logdet + mhd) + logw_ref[...]                           # (TB, C)

    # Softmax over components — everything is resident, no online recurrence.
    m = jnp.max(lp, axis=-1, keepdims=True)
    e = jnp.exp(lp - m)                                                  # (TB, C)
    denom = jnp.sum(e, axis=-1, keepdims=True)                           # (TB, 1)

    # Broadcast the (unnormalized) component weights over each block of D lanes.
    e_exp = jnp.dot(e, selT_ref[...],
                    preferred_element_type=jnp.float32)                  # (TB, C*D)

    # sum_c p_c * compo_c  ==  (-(e .* rot/lam) @ [U_c^T stacked]) / denom
    num = jnp.dot(-(e_exp * z), w2_ref[...],
                  preferred_element_type=jnp.float32)                    # (TB, D)
    o_ref[...] = (num * pl.reciprocal(denom)).astype(o_ref.dtype)


def gmm_ansatz_forward(x, t, params, sigma=5.0):
    """Pallas implementation of GMM_ansatz_net.forward(x, t)."""
    mus = params["mus"].astype(jnp.float32)
    Us = params["Us"].astype(jnp.float32)
    logLambdas = params["logLambdas"].astype(jnp.float32)
    logweights = params["logweights"].astype(jnp.float32)

    B, D = x.shape
    C = mus.shape[0]

    # marginal_prob_std(t, sigma)^2  (glue, plain JAX)
    std2 = (sigma ** (2.0 * t) - 1.0) / (2.0 * jnp.log(sigma))
    sig2 = std2.reshape(B, 1).astype(jnp.float32)

    # Parameter-only preprocessing (done once, outside the kernel):
    #   W1[d, c*D+e]  = Us[c, d, e]              -> rot_flat = x @ W1 - muU
    #   muU[c*D+e]    = sum_d mus[c, d] Us[c, d, e]
    #   W2[c*D+d, e]  = Us[c, e, d]              -> score numerator = Z @ W2
    W1 = jnp.transpose(Us, (1, 0, 2)).reshape(D, C * D)
    muU = jnp.einsum('cd,cde->ce', mus, Us).reshape(1, C * D)
    W2 = jnp.transpose(Us, (0, 2, 1)).reshape(C * D, D)
    explam = jnp.exp(logLambdas).reshape(1, C * D)
    logw = logweights.reshape(1, C)
    sel = jnp.repeat(jnp.eye(C, dtype=jnp.float32), D, axis=0)   # (C*D, C)
    selT = jnp.transpose(sel)                                    # (C, C*D)

    # Grid runs over batch tiles only (parallel -> both TCs on v7x).
    if B % 256 == 0:
        TB = 256
    elif B % 128 == 0:
        TB = 128
    else:
        TB = B          # small-B case: one resident block (multiple of 8 assumed)
    grid = (B // TB,)

    grid_spec = pltpu.PrefetchScalarGridSpec(
        num_scalar_prefetch=0,
        grid=grid,
        in_specs=[
            pl.BlockSpec((TB, D), lambda i: (i, 0)),        # x
            pl.BlockSpec((D, C * D), lambda i: (0, 0)),     # W1  (resident)
            pl.BlockSpec((C * D, D), lambda i: (0, 0)),     # W2  (resident)
            pl.BlockSpec((1, C * D), lambda i: (0, 0)),     # mu_c @ U_c
            pl.BlockSpec((1, C * D), lambda i: (0, 0)),     # exp(logLambdas)
            pl.BlockSpec((1, C), lambda i: (0, 0)),         # logweights
            pl.BlockSpec((C * D, C), lambda i: (0, 0)),     # selector
            pl.BlockSpec((C, C * D), lambda i: (0, 0)),     # selector^T
            pl.BlockSpec((TB, 1), lambda i: (i, 0)),        # sigma(t)^2
        ],
        out_specs=pl.BlockSpec((TB, D), lambda i: (i, 0)),
    )

    return pl.pallas_call(
        gmm_score_kernel,
        out_shape=jax.ShapeDtypeStruct((B, D), jnp.float32),
        grid_spec=grid_spec,
        compiler_params=pltpu.CompilerParams(
            dimension_semantics=("parallel",)),
    )(x.astype(jnp.float32), W1, W2, muU, explam, logw, sel, selT, sig2)


def gmm_ansatz_forward_ref(x, t, params, sigma=5.0):
    """Pure-JAX reference mirroring the PyTorch module exactly."""
    mus = params["mus"]
    Us = params["Us"]
    logLambdas = params["logLambdas"]
    logweights = params["logweights"]

    std = jnp.sqrt((sigma ** (2.0 * t) - 1.0) / 2.0 / jnp.log(sigma))
    Lambdas = jnp.exp(logLambdas)[None, :, :] + (std ** 2)[:, None, None]

    logdetSigmas = jnp.sum(jnp.log(Lambdas), axis=-1)
    residuals = x[:, None, :] - mus[None, :, :]
    rot = jnp.einsum('BCD,CDE->BCE', residuals, Us)
    MHdists = jnp.sum(rot ** 2 / Lambdas, axis=-1)
    logprobs = -0.5 * (logdetSigmas + MHdists) + logweights[None, :]
    participance = jax.nn.softmax(logprobs, axis=-1)
    compo = jnp.einsum('BCD,CED->BCE', -(rot / Lambdas), Us)
    return jnp.einsum('BC,BCE->BE', participance, compo)


if __name__ == "__main__":
    key = jax.random.PRNGKey(0)
    B, D, C = 8, 16, 4  # batch, ndim, n_components

    k1, k2, k3, k4, k5 = jax.random.split(key, 5)
    params = {
        "mus": jax.random.normal(k1, (C, D), jnp.float32),
        "Us": jax.random.normal(k2, (C, D, D), jnp.float32),
        "logLambdas": jax.random.normal(k3, (C, D), jnp.float32),
        "logweights": jnp.log(jnp.ones((C,), jnp.float32) / C),
    }
    x = jax.random.normal(k4, (B, D), jnp.float32)
    t = jax.random.uniform(k5, (B,), jnp.float32, minval=0.1, maxval=1.0)

    out = gmm_ansatz_forward(x, t, params)
    out = jax.block_until_ready(out)

    ref = gmm_ansatz_forward_ref(x, t, params)
    assert out.shape == (B, D)
    assert jnp.allclose(out, ref, rtol=1e-4, atol=1e-4), (
        f"max abs err {jnp.max(jnp.abs(out - ref))}")

    print("KERNEL_OK")
</pallas_src>

<mosaic_0001>
module attributes {stable_mosaic.version = 11 : i64} {
  func.func @gmm_score_kernel(%arg0: i32, %arg1: memref<8x16xf32, #tpu.memory_space<vmem>>, %arg2: memref<16x64xf32, #tpu.memory_space<vmem>>, %arg3: memref<64x16xf32, #tpu.memory_space<vmem>>, %arg4: memref<1x64xf32, #tpu.memory_space<vmem>>, %arg5: memref<1x64xf32, #tpu.memory_space<vmem>>, %arg6: memref<1x4xf32, #tpu.memory_space<vmem>>, %arg7: memref<64x4xf32, #tpu.memory_space<vmem>>, %arg8: memref<4x64xf32, #tpu.memory_space<vmem>>, %arg9: memref<8x1xf32, #tpu.memory_space<vmem>>, %arg10: memref<8x16xf32, #tpu.memory_space<vmem>>) attributes {dimension_semantics = [#tpu.dimension_semantics<parallel>], iteration_bounds = array<i64: 1>, scalar_prefetch = 0 : i64, scratch_operands = 0 : i64, tpu.core_type = #tpu.core_type<tc>, window_params = [{transform_indices = @transform_0, window_bounds = array<i64: 8, 16>}, {pipeline_mode = #tpu.pipeline_mode<synchronous>, transform_indices = @transform_1, window_bounds = array<i64: 16, 64>}, {pipeline_mode = #tpu.pipeline_mode<synchronous>, transform_indices = @transform_2, window_bounds = array<i64: 64, 16>}, {pipeline_mode = #tpu.pipeline_mode<synchronous>, transform_indices = @transform_3, window_bounds = array<i64: 1, 64>}, {pipeline_mode = #tpu.pipeline_mode<synchronous>, transform_indices = @transform_4, window_bounds = array<i64: 1, 64>}, {pipeline_mode = #tpu.pipeline_mode<synchronous>, transform_indices = @transform_5, window_bounds = array<i64: 1, 4>}, {pipeline_mode = #tpu.pipeline_mode<synchronous>, transform_indices = @transform_6, window_bounds = array<i64: 64, 4>}, {pipeline_mode = #tpu.pipeline_mode<synchronous>, transform_indices = @transform_7, window_bounds = array<i64: 4, 64>}, {transform_indices = @transform_8, window_bounds = array<i64: 8, 1>}, {transform_indices = @transform_9, window_bounds = array<i64: 8, 16>}]} {
    %c0 = arith.constant 0 : index
    %c0_0 = arith.constant 0 : index
    %0 = vector.load %arg1[%c0, %c0_0] : memref<8x16xf32, #tpu.memory_space<vmem>>, vector<8x16xf32>
    %c0_1 = arith.constant 0 : index
    %c0_2 = arith.constant 0 : index
    %1 = vector.load %arg9[%c0_1, %c0_2] : memref<8x1xf32, #tpu.memory_space<vmem>>, vector<8x1xf32>
    %c0_3 = arith.constant 0 : index
    %c0_4 = arith.constant 0 : index
    %2 = vector.load %arg2[%c0_3, %c0_4] : memref<16x64xf32, #tpu.memory_space<vmem>>, vector<16x64xf32>
    %cst = arith.constant dense<0.000000e+00> : vector<8x64xf32>
    %3 = tpu.matmul %0, %2, %cst {dimension_numbers = #tpu.dot_dimension_numbers<[1], [0], [0], [1], [0, 0, 1, 1], [], []>} : vector<8x16xf32>, vector<16x64xf32>, vector<8x64xf32> -> vector<8x64xf32>
    %c0_5 = arith.constant 0 : index
    %c0_6 = arith.constant 0 : index
    %4 = vector.load %arg4[%c0_5, %c0_6] : memref<1x64xf32, #tpu.memory_space<vmem>>, vector<1x64xf32>
    %5 = vector.broadcast %4 : vector<1x64xf32> to vector<8x64xf32>
    %6 = arith.subf %3, %5 : vector<8x64xf32>
    %c0_7 = arith.constant 0 : index
    %c0_8 = arith.constant 0 : index
    %7 = vector.load %arg5[%c0_7, %c0_8] : memref<1x64xf32, #tpu.memory_space<vmem>>, vector<1x64xf32>
    %8 = vector.broadcast %7 : vector<1x64xf32> to vector<8x64xf32>
    %9 = vector.broadcast %1 : vector<8x1xf32> to vector<8x64xf32>
    %10 = arith.addf %8, %9 : vector<8x64xf32>
    %cst_9 = arith.constant 1.000000e+00 : f32
    %11 = vector.broadcast %cst_9 : f32 to vector<8x64xf32>
    %12 = arith.divf %11, %10 : vector<8x64xf32>
    %13 = arith.mulf %6, %12 : vector<8x64xf32>
    %c0_10 = arith.constant 0 : index
    %c0_11 = arith.constant 0 : index
    %14 = vector.load %arg7[%c0_10, %c0_11] : memref<64x4xf32, #tpu.memory_space<vmem>>, vector<64x4xf32>
    %15 = math.log %10 : vector<8x64xf32>
    %cst_12 = arith.constant dense<0.000000e+00> : vector<8x4xf32>
    %16 = tpu.matmul %15, %14, %cst_12 {dimension_numbers = #tpu.dot_dimension_numbers<[1], [0], [0], [1], [0, 0, 1, 1], [], []>} : vector<8x64xf32>, vector<64x4xf32>, vector<8x4xf32> -> vector<8x4xf32>
    %17 = arith.mulf %6, %13 : vector<8x64xf32>
    %cst_13 = arith.constant dense<0.000000e+00> : vector<8x4xf32>
    %18 = tpu.matmul %17, %14, %cst_13 {dimension_numbers = #tpu.dot_dimension_numbers<[1], [0], [0], [1], [0, 0, 1, 1], [], []>} : vector<8x64xf32>, vector<64x4xf32>, vector<8x4xf32> -> vector<8x4xf32>
    %19 = arith.addf %16, %18 : vector<8x4xf32>
    %cst_14 = arith.constant -5.000000e-01 : f32
    %20 = vector.broadcast %cst_14 : f32 to vector<8x4xf32>
    %21 = arith.mulf %20, %19 : vector<8x4xf32>
    %c0_15 = arith.constant 0 : index
    %c0_16 = arith.constant 0 : index
    %22 = vector.load %arg6[%c0_15, %c0_16] : memref<1x4xf32, #tpu.memory_space<vmem>>, vector<1x4xf32>
    %23 = vector.broadcast %22 : vector<1x4xf32> to vector<8x4xf32>
    %24 = arith.addf %21, %23 : vector<8x4xf32>
    %cst_17 = arith.constant dense<0xFF800000> : vector<8xf32>
    %25 = vector.multi_reduction <maximumf>, %24, %cst_17 [1] : vector<8x4xf32> to vector<8xf32>
    %26 = vector.shape_cast %25 : vector<8xf32> to vector<8x1xf32>
    %27 = vector.broadcast %26 : vector<8x1xf32> to vector<8x4xf32>
    %28 = arith.subf %24, %27 : vector<8x4xf32>
    %29 = math.exp %28 : vector<8x4xf32>
    %cst_18 = arith.constant dense<0.000000e+00> : vector<8xf32>
    %30 = vector.multi_reduction <add>, %29, %cst_18 [1] : vector<8x4xf32> to vector<8xf32>
    %31 = vector.shape_cast %30 : vector<8xf32> to vector<8x1xf32>
    %c0_19 = arith.constant 0 : index
    %c0_20 = arith.constant 0 : index
    %32 = vector.load %arg8[%c0_19, %c0_20] : memref<4x64xf32, #tpu.memory_space<vmem>>, vector<4x64xf32>
    %cst_21 = arith.constant dense<0.000000e+00> : vector<8x64xf32>
    %33 = tpu.matmul %29, %32, %cst_21 {dimension_numbers = #tpu.dot_dimension_numbers<[1], [0], [0], [1], [0, 0, 1, 1], [], []>} : vector<8x4xf32>, vector<4x64xf32>, vector<8x64xf32> -> vector<8x64xf32>
    %34 = arith.mulf %33, %13 : vector<8x64xf32>
    %cst_22 = arith.constant 0.000000e+00 : f32
    %35 = vector.broadcast %cst_22 : f32 to vector<8x64xf32>
    %36 = arith.subf %35, %34 : vector<8x64xf32>
    %c0_23 = arith.constant 0 : index
    %c0_24 = arith.constant 0 : index
    %37 = vector.load %arg3[%c0_23, %c0_24] : memref<64x16xf32, #tpu.memory_space<vmem>>, vector<64x16xf32>
    %cst_25 = arith.constant dense<0.000000e+00> : vector<8x16xf32>
    %38 = tpu.matmul %36, %37, %cst_25 {dimension_numbers = #tpu.dot_dimension_numbers<[1], [0], [0], [1], [0, 0, 1, 1], [], []>} : vector<8x64xf32>, vector<64x16xf32>, vector<8x16xf32> -> vector<8x16xf32>
    %39 = tpu.reciprocal %31 : vector<8x1xf32> -> vector<8x1xf32>
    %40 = vector.broadcast %39 : vector<8x1xf32> to vector<8x16xf32>
    %41 = arith.mulf %38, %40 : vector<8x16xf32>
    %c0_26 = arith.constant 0 : index
    %c0_27 = arith.constant 0 : index
    %42 = vector.load %arg10[%c0_26, %c0_27] : memref<8x16xf32, #tpu.memory_space<vmem>>, vector<8x16xf32>
    tpu.vector_store %arg10[%c0_26, %c0_27], %41 {strides = array<i32>} : memref<8x16xf32, #tpu.memory_space<vmem>>, vector<8x16xf32>,
    return
  }
  func.func @transform_0(%arg0: i32) -> (i32, i32) {
    %c0_i32 = arith.constant 0 : i32
    %c0_i32_0 = arith.constant 0 : i32
    return %arg0, %c0_i32 : i32, i32
  }
  func.func @transform_1(%arg0: i32) -> (i32, i32) {
    %c0_i32 = arith.constant 0 : i32
    %c0_i32_0 = arith.constant 0 : i32
    %c0_i32_1 = arith.constant 0 : i32
    return %c0_i32, %c0_i32_0 : i32, i32
  }
  func.func @transform_2(%arg0: i32) -> (i32, i32) {
    %c0_i32 = arith.constant 0 : i32
    %c0_i32_0 = arith.constant 0 : i32
    %c0_i32_1 = arith.constant 0 : i32
    return %c0_i32, %c0_i32_0 : i32, i32
  }
  func.func @transform_3(%arg0: i32) -> (i32, i32) {
    %c0_i32 = arith.constant 0 : i32
    %c0_i32_0 = arith.constant 0 : i32
    %c0_i32_1 = arith.constant 0 : i32
    return %c0_i32, %c0_i32_0 : i32, i32
  }
  func.func @transform_4(%arg0: i32) -> (i32, i32) {
    %c0_i32 = arith.constant 0 : i32
    %c0_i32_0 = arith.constant 0 : i32
    %c0_i32_1 = arith.constant 0 : i32
    return %c0_i32, %c0_i32_0 : i32, i32
  }
  func.func @transform_5(%arg0: i32) -> (i32, i32) {
    %c0_i32 = arith.constant 0 : i32
    %c0_i32_0 = arith.constant 0 : i32
    %c0_i32_1 = arith.constant 0 : i32
    return %c0_i32, %c0_i32_0 : i32, i32
  }
  func.func @transform_6(%arg0: i32) -> (i32, i32) {
    %c0_i32 = arith.constant 0 : i32
    %c0_i32_0 = arith.constant 0 : i32
    %c0_i32_1 = arith.constant 0 : i32
    return %c0_i32, %c0_i32_0 : i32, i32
  }
  func.func @transform_7(%arg0: i32) -> (i32, i32) {
    %c0_i32 = arith.constant 0 : i32
    %c0_i32_0 = arith.constant 0 : i32
    %c0_i32_1 = arith.constant 0 : i32
    return %c0_i32, %c0_i32_0 : i32, i32
  }
  func.func @transform_8(%arg0: i32) -> (i32, i32) {
    %c0_i32 = arith.constant 0 : i32
    %c0_i32_0 = arith.constant 0 : i32
    return %arg0, %c0_i32 : i32, i32
  }
  func.func @transform_9(%arg0: i32) -> (i32, i32) {
    %c0_i32 = arith.constant 0 : i32
    %c0_i32_0 = arith.constant 0 : i32
    return %arg0, %c0_i32 : i32, i32
  }
}

</mosaic_0001>

<bundles_post_ra>
// kernel: tpu_custom_call.1
= control target key start
LH: loop header
LB: loop body
LE: loop exit
PB: predicated region body
PF: predicated region fallthrough
CT: control target
= control target key end

     0   :  { %v679_v2 = vmov 0.0|0.0   ;;  %vm680_vm0 = vmmov 0   ;;  %v681_v4 = vmov 0.0   ;;  %v682_v6 = vmov 0   ;;  %s847_s0 = inlined_call_operand.vmem [shape: f32[8,16], index: 0, kind: input, shape index: {}]   ;;  %s848_s1 = inlined_call_operand.vmem [shape: f32[16,64], index: 1, kind: input, shape index: {}]   ;;  %s849_s2 = inlined_call_operand.vmem [shape: f32[64,16], index: 2, kind: input, shape index: {}]   ;;  %s850_s3 = inlined_call_operand.vmem [shape: f32[1,64], index: 3, kind: input, shape index: {}]   ;;  %s851_s4 = inlined_call_operand.vmem [shape: f32[1,64], index: 4, kind: input, shape index: {}]   ;;  %s852_s5 = inlined_call_operand.vmem [shape: f32[1,4], index: 5, kind: input, shape index: {}]   ;;  %s853_s6 = inlined_call_operand.vmem [shape: f32[64,4], index: 6, kind: input, shape index: {}]   ;;  %s854_s7 = inlined_call_operand.vmem [shape: f32[4,64], index: 7, kind: input, shape index: {}]   ;;  %s855_s8 = inlined_call_operand.vmem [shape: f32[8,1], index: 8, kind: input, shape index: {}]   ;;  %s856_s9 = inlined_call_operand.hbm [shape: f32[8,16], index: 9, kind: output, shape index: {}]  }
   0x1   :  { %v35_v0 = vld [vmem:[%s848_s1] sm:$0xff]  ;;  %v36_v1 = vld [vmem:[%s848_s1 + $0x8] sm:$0xff]  ;;  %600 = vmatprep.subr.bf16.mxu0 %v679_v2  ;;  %535 = vmatprep.mubr.msk.f32.mxu0 %vm680_vm0, %v681_v4 }
   0x2   :  { %v601_v3 = vpack.c.bf16 %v36_v1, %v35_v0  ;;  %v34_v5 = vld [vmem:[%s855_s8] sm:$0xff]  ;;  %646 = vset.pattern.permute.xlu0 %v682_v6  ;;  %603 = vmatprep.subr.bf16.mxu1 %v679_v2 }
   0x3   :  { %14 = vsyncpa [#allocation3], 0  ;;  %v33_v7 = vld [vmem:[%s847_s0] sm:$0xff]  ;;  %vm37_vm1 = vcmask 130048   ;;  %128 = vperm.xlu0 %646, %v34_v5   ;;  %554 = vmatprep.mubr.msk.f32.mxu1 %vm680_vm0, %v681_v4  ;;  %v136_v9 = vld [vmem:[%s853_s6 + $0x8] sm:$0xff]  ;;  %vm146_vm2 = vcmask 523264  }
   0x4   :  { %602 = vmatpush3.bf16.msra.mxu0 %v601_v3  ;;  %v135_v8 = vld [vmem:[%s853_s6] sm:$0xff]  ;;  %v137_v10 = vld [vmem:[%s853_s6 + $0x10] sm:$0xff]  ;;  %v138_v12 = vld [vmem:[%s853_s6 + $0x18] sm:$0xff]  ;;  %vm302_vm3 = vcmask 31744   ;;  %vm316_vm4 = vcmask 1043456   ;;  %s683_s25 = smov [#allocation2]  }
   0x5   :  { %576 = vmatprep.subr.mxu0 %v681_v4  ;;  %v604_v11 = vpack.c.bf16 %v136_v9, %v135_v8  ;;  %v607_v13 = vpack.c.bf16 %v138_v12, %v137_v10  ;;  %v139_v14 = vld [vmem:[%s853_s6 + $0x20] sm:$0xff]  ;;  %v140_v15 = vld [vmem:[%s853_s6 + $0x28] sm:$0xff]  ;;  %v141_v17 = vld [vmem:[%s853_s6 + $0x30] sm:$0xff]  ;;  %s482_s26 = sshll.u32 %s683_s25, 4  ;;  %s483_s26 = int_to_ptr.vmem [resolvable:$true] %s482_s26 }
   0x6   :  { %v610_v16 = vpack.c.bf16 %v140_v15, %v139_v14  ;;  %v142_v18 = vld [vmem:[%s853_s6 + $0x38] sm:$0xff]  ;;  %v492_v20 = vld [vmem:[%s851_s4] ss:$0 sm:$0xff]  ;;  %v393_v45 = vld [vmem:[%s849_s2 + $0x8] sm:$0xff]  ;;  %p660_p1 = scmp.lt.s32.totalorder %s483_s26, %s483_s26 }
   0x7   :  { %536 = vmatmul.mubr.msk.f32.vlgmr.msra.gmra.mrb[0].mxu0 %vm37_vm1, %v33_v7  ;;  %605 = vmatpush3.bf16.msra.mxu1 %v604_v11  ;;  %v613_v19 = vpack.c.bf16 %v142_v18, %v141_v17  ;;  %v491_v23 = vld [vmem:[%s850_s3] ss:$0 sm:$0xff]  ;;  %v394_v46 = vld [vmem:[%s849_s2 + $0x10] sm:$0xff]  ;;  %v395_v48 = vld [vmem:[%s849_s2 + $0x18] sm:$0xff] }
   0x8   :  { %578 = vmatprep.mubr.msk.f32.mxu0 %vm680_vm0, %v681_v4  ;;  %606 = vmatprep.subr.bf16.mxu1 %v679_v2  ;;  %v495_v33 = vld [vmem:[%s852_s5] ss:$0 sm:$0xff]  ;;  %v631_v49 = vpack.c.bf16 %v395_v48, %v394_v46  ;;  %v397_v51 = vld [vmem:[%s849_s2 + $0x28] sm:$0xff]  ;;  %v398_v53 = vld [vmem:[%s849_s2 + $0x30] sm:$0xff] }
   0x9   :  { %v312_v38 = vld [vmem:[%s854_s7] sm:$0xf]  ;;  %v399_v54 = vld [vmem:[%s849_s2 + $0x38] sm:$0xff] }
   0xa   :  { %577 = vmatpush3.msk.msra.mxu0 %vm316_vm4, %v312_v38  ;;  %v392_v44 = vld [vmem:[%s849_s2] sm:$0xff]  ;;  %v637_v55 = vpack.c.bf16 %v399_v54, %v398_v53 }
   0xb   :  { %608 = vmatpush3.bf16.msra.mxu1 %v607_v13  ;;  %627 = vmatprep.subr.bf16.mxu0 %v679_v2  ;;  %v628_v47 = vpack.c.bf16 %v393_v45, %v392_v44  ;;  %v396_v50 = vld [vmem:[%s849_s2 + $0x20] sm:$0xff]  ;;  %s655_s2 = scalar_lea.vmem %s483_s26, 128 }
   0xc   :  { %609 = vmatprep.subr.bf16.mxu1 %v679_v2  ;;  %v634_v52 = vpack.c.bf16 %v397_v51, %v396_v50  ;;  %p656_p0 = scmp.ne.s32.totalorder %s483_s26, %s655_s2  ;;  %p661_p2 = scmp.lt.s32.totalorder %s655_s2, %s655_s2 }
   0xe   :  { %p662_p3 = por %p661_p2, %p660_p1 }
   0xf   :  { %611 = vmatpush3.bf16.msra.mxu1 %v610_v16 }
  0x10   :  { %612 = vmatprep.subr.bf16.mxu1 %v679_v2  ;;  %p663_p4 = pnand %p662_p3, %p656_p0 }
  0x13   :  { %614 = vmatpush3.bf16.msra.mxu1 %v613_v19 }
  0x14   :  { %615 = vmatprep.subr.bf16.mxu1 %v679_v2 }
  0x82   :  { %v129_v21 = vpop.permute.xlu0 %128 }
  0x83   :  { %v131_v22 = vadd.f32 %v492_v20, %v129_v21 }
  0x85   :  { %647 = vrcp.f32 %v131_v22 }
  0x86   :  { %649 = vlog2.f32 %v131_v22 }
  0x8f   :  { %v648_v24 = vpop.eup %647 }
  0x90   :  { %v650_v30 = vpop.eup %649 }
  0x91   :  { %v144_v31 = vmul.f32 0.6931472, %v650_v30 }
  0xda   :  { %v107_v25 = vpop.f32.mrb[0].mxu0 }
  0xdb   :  { %v118_v26 = vsub.f32 %v107_v25, %v491_v23  ;;  %v537_v27 = vpop.f32.mrb[1].mxu0 }
  0xdd   :  { %v134_v28 = vmul.f32 %v648_v24, %v118_v26 }
  0xdf   :  { %v145_v29 = vmul.f32 %v134_v28, %v118_v26 }
  0xe1   :  { %555 = vmatmul.mubr.msk.f32.vlgmr.msra.gmra.mrb[0].mxu1 %vm146_vm2, %v145_v29 }
  0xe2   :  { %617 = vmatpush3.bf16.msra.mxu1 %v604_v11  ;;  %573 = vmatprep.mubr.msk.f32.mxu1 %vm680_vm0, %v681_v4 }
  0xe3   :  { %618 = vmatprep.subr.bf16.mxu1 %v679_v2 }
  0xe6   :  { %620 = vmatpush3.bf16.msra.mxu1 %v607_v13 }
  0xe7   :  { %621 = vmatprep.subr.bf16.mxu1 %v679_v2 }
  0xea   :  { %623 = vmatpush3.bf16.msra.mxu1 %v610_v16 }
  0xeb   :  { %624 = vmatprep.subr.bf16.mxu1 %v679_v2 }
  0xee   :  { %626 = vmatpush3.bf16.msra.mxu1 %v613_v19 }
  0xf1   :  { %574 = vmatmul.mubr.msk.f32.vlgmr.msra.gmra.mrb[0].mxu1 %vm146_vm2, %v144_v31 }
 0x1c4   :  { %v289_v32 = vpop.f32.mrb[0].mxu1 }
 0x1c5   :  { %v293_v34 = vmul.f32 -0.5, %v289_v32  ;;  %v575_v35 = vpop.f32.mrb[1].mxu1 }
 0x1c7   :  { %v301_v36 = vadd.f32 %v495_v33, %v293_v34 }
 0x1c9   :  { %v303_v37 = vsel %vm302_vm3, %v301_v36, -inf }
 0x1ca   :  { %304 = vmax.xlane.f32.xlu0 %v303_v37 }
 0x257   :  { %v305_v39 = vpop.xlane.xlu0 %304 }
 0x258   :  { %v306_v40 = vsub.f32 %v301_v36, %v305_v39 }
 0x25a   :  { %v307_v41 = vmul.f32 1.442695, %v306_v40 }
 0x25c   :  { %651 = vpow2.f32 %v307_v41 }
 0x266   :  { %v652_v42 = vpop.eup %651 }
 0x267   :  { %579 = vmatmul.mubr.msk.f32.vlgmr.msra.gmra.mrb[2].mxu0 %vm302_vm3, %v652_v42  ;;  %v309_v43 = vsel %vm302_vm3, %v652_v42, 0.0 }
 0x268   :  { %310 = vadd.xlane.f32.xlu1 %v309_v43  ;;  %597 = vmatprep.mubr.msk.f32.mxu0 %vm680_vm0, %v681_v4 }
 0x269   :  { %629 = vmatpush3.bf16.msra.mxu0 %v628_v47 }
 0x26a   :  { %630 = vmatprep.subr.bf16.mxu0 %v679_v2 }
 0x26d   :  { %632 = vmatpush3.bf16.msra.mxu0 %v631_v49 }
 0x26e   :  { %633 = vmatprep.subr.bf16.mxu0 %v679_v2 }
 0x271   :  { %635 = vmatpush3.bf16.msra.mxu0 %v634_v52 }
 0x272   :  { %636 = vmatprep.subr.bf16.mxu0 %v679_v2 }
 0x275   :  { %638 = vmatpush3.bf16.msra.mxu0 %v637_v55 }
 0x2f5   :  { %v311_v60 = vpop.xlane.xlu1 %310 }
 0x2f6   :  { %653 = vrcp.f32 %v311_v60 }
 0x300   :  { %v654_v61 = vpop.eup %653 }
 0x33a   :  { %v386_v56 = vpop.f32.mrb[2].mxu0 }
 0x33b   :  { %v390_v57 = vmul.f32 %v386_v56, %v134_v28  ;;  %v580_v58 = vpop.f32.mrb[3].mxu0 }
 0x33d   :  { %v391_v59 = vsub.f32 0.0, %v390_v57 }
 0x33f   :  { %598 = vmatmul.mubr.msk.f32.vlgmr.msra.gmra.mrb[4].mxu0 %vm146_vm2, %v391_v59 }
 0x412   :  { %v469_v62 = vpop.f32.mrb[4].mxu0 }
 0x413   :  { %v474_v63 = vmul.f32 %v654_v61, %v469_v62  ;;  %v599_v0 = vpop.f32.mrb[5].mxu0 }
 0x415   :  { %475 = vst.msk [vmem:[#allocation2] sm:$0xff] %vm37_vm1, %v474_v63 }
 0x416   :  { %666 = shalt.err (!%p663_p4)
}
 0x417   :  { %s667_s29 = scalar_lea.hbm %s856_s9, 128 }
 0x418   :  { %p668_p5 = scmp.ne.s32.totalorder %s856_s9, %s667_s29  ;;  %p671_p6 = scmp.lt.u32.totalorder %s667_s29, %s856_s9 }
 0x41a   :  { %p673_p7 = pnand %p671_p6, %p668_p5 }
 0x41c   :  { %676 = shalt.err (!%p673_p7)
}
 0x41d   :  { %485 = dma.vmem_to_hbm [thread:$0]  %s483_s26, 128, %s856_s9, [#allocation3]  }
 0x41e   :  { %677 = dma.done.wait [#allocation3], 128  }
 0x41f   :  { %678 = vsyncadd [#allocation3], 4294967168 }
 0x420   :  { %489 = vsyncpa [#allocation3], 1 }

</bundles_post_ra>
